<compile_context>
chip_gen: v5e
topology: v5e:2x2
jax: 0.10.0
libtpu: 0.0.40
codegen_flags: <defaults>
</compile_context>

<pallas_src>
import jax
import jax.numpy as jnp
from jax.experimental import pallas as pl
from jax.experimental.pallas import tpu as pltpu


def _round_up(x: int, m: int) -> int:
    return ((x + m - 1) // m) * m


def _mlp_kernel(x_ref, w1_ref, b1_ref, w2_ref, b2_ref, o_ref):
    # ---- linear1: bf16 x @ bf16 W1 -> f32 accumulator (MXU) ----
    h = jnp.dot(x_ref[...], w1_ref[...], preferred_element_type=jnp.float32)
    h = h + b1_ref[...]                       # (1, Hp) broadcast over batch tile
    # ---- sigmoid via tanh: one EUP transcendental + cheap VPU ops ----
    h = 0.5 * (jnp.tanh(0.5 * h) + 1.0)
    # ---- linear2: bf16 h @ bf16 W2 -> f32 accumulator (MXU) ----
    z = jnp.dot(h.astype(jnp.bfloat16), w2_ref[...],
                preferred_element_type=jnp.float32)
    z = z + b2_ref[...]                       # padded cols carry -1e30 bias
    # ---- numerically stable softmax over the (lane-dense) last axis ----
    z = z - jnp.max(z, axis=-1, keepdims=True)
    e = jnp.exp(z)                            # padded cols underflow to 0
    denom = jnp.sum(e, axis=-1, keepdims=True)
    o_ref[...] = (e * pl.reciprocal(denom, approx=True)).astype(o_ref.dtype)


def neural_net_forward(x, w1, b1, w2, b2, *, batch_tile=256):
    """x: (B, In) f32; w1: (In, H); b1: (1, H); w2: (H, Out); b2: (1, Out)."""
    B, In = x.shape
    H = w1.shape[1]
    Out = w2.shape[1]

    # Pad feature dims to the 128-lane grain; pad batch to the batch tile.
    In_p = _round_up(In, 128)
    H_p = _round_up(H, 128)
    Out_p = _round_up(Out, 128)
    TB = _round_up(min(batch_tile, B), 8)
    B_p = _round_up(B, TB)

    # One-time wrapper-side padding + bf16 cast (weight-stationary layout).
    xp = jnp.zeros((B_p, In_p), jnp.bfloat16).at[:B, :In].set(x.astype(jnp.bfloat16))
    w1p = jnp.zeros((In_p, H_p), jnp.bfloat16).at[:In, :H].set(w1.astype(jnp.bfloat16))
    b1p = jnp.zeros((1, H_p), jnp.float32).at[:, :H].set(b1.astype(jnp.float32))
    w2p = jnp.zeros((H_p, Out_p), jnp.bfloat16).at[:H, :Out].set(w2.astype(jnp.bfloat16))
    # -1e30 bias on padded output columns -> exp() == 0 -> softmax ignores them.
    b2p = jnp.full((1, Out_p), -1e30, jnp.float32).at[:, :Out].set(b2.astype(jnp.float32))

    grid = (B_p // TB,)

    # VMEM budget derived from actual tile bytes (stays well under v7x's 64 MiB).
    tile_bytes = (
        2 * (TB * In_p * 2)                              # double-buffered x tile (bf16)
        + 2 * (TB * Out_p * 4)                           # double-buffered out tile (f32)
        + 2 * (In_p * H_p * 2 + H_p * Out_p * 2          # resident weights (bf16)
               + H_p * 4 + Out_p * 4)                    # resident biases (f32)
    )
    vmem_limit = min(max(int(tile_bytes * 1.5) + (4 << 20), 16 << 20), 48 << 20)

    cost = pl.CostEstimate(
        flops=2 * B_p * (In_p * H_p + H_p * Out_p),
        transcendentals=B_p * (H_p + Out_p),
        bytes_accessed=(xp.size * 2 + w1p.size * 2 + w2p.size * 2
                        + b1p.size * 4 + b2p.size * 4 + B_p * Out_p * 4),
    )

    out_padded = pl.pallas_call(
        _mlp_kernel,
        out_shape=jax.ShapeDtypeStruct((B_p, Out_p), jnp.float32),
        grid_spec=pltpu.PrefetchScalarGridSpec(
            num_scalar_prefetch=0,
            grid=grid,
            in_specs=[
                pl.BlockSpec((TB, In_p), lambda i: (i, 0)),   # x: tiled over batch
                pl.BlockSpec((In_p, H_p), lambda i: (0, 0)),  # W1: resident
                pl.BlockSpec((1, H_p), lambda i: (0, 0)),     # b1: resident
                pl.BlockSpec((H_p, Out_p), lambda i: (0, 0)), # W2: resident
                pl.BlockSpec((1, Out_p), lambda i: (0, 0)),   # b2: resident
            ],
            out_specs=pl.BlockSpec((TB, Out_p), lambda i: (i, 0)),
        ),
        compiler_params=pltpu.CompilerParams(
            dimension_semantics=("parallel",),   # batch tiles split across TCs (v7x)
            vmem_limit_bytes=vmem_limit,
        ),
        cost_estimate=cost,
    )(xp, w1p, b1p, w2p, b2p)

    return out_padded[:B, :Out]


def _reference_forward(x, w1, b1, w2, b2):
    h = jax.nn.sigmoid(x @ w1 + b1)
    z = h @ w2 + b2
    return jax.nn.softmax(z, axis=-1)


if __name__ == "__main__":
    # Small shapes implied by the module: input_size=32, hl_size=64, output_size=16.
    # batch=16 with batch_tile=8 exercises the tiled (grid=(2,)) pipelined path.
    batch, input_size, hl_size, output_size = 16, 32, 64, 16

    key = jax.random.PRNGKey(0)
    kx, kw1, kb1, kw2, kb2 = jax.random.split(key, 5)

    x = jax.random.normal(kx, (batch, input_size), dtype=jnp.float32)

    # Deterministic parameter init (uniform, akin to nn.Linear default bounds)
    bound1 = 1.0 / (input_size ** 0.5)
    w1 = jax.random.uniform(kw1, (input_size, hl_size), jnp.float32, -bound1, bound1)
    b1 = jax.random.uniform(kb1, (1, hl_size), jnp.float32, -bound1, bound1)
    bound2 = 1.0 / (hl_size ** 0.5)
    w2 = jax.random.uniform(kw2, (hl_size, output_size), jnp.float32, -bound2, bound2)
    b2 = jax.random.uniform(kb2, (1, output_size), jnp.float32, -bound2, bound2)

    out = neural_net_forward(x, w1, b1, w2, b2, batch_tile=8)
    out = jax.block_until_ready(out)

    ref = _reference_forward(x, w1, b1, w2, b2)
    assert out.shape == (batch, output_size)
    # Tolerance relaxed for bf16 matmul inputs + approx EUP reciprocal.
    assert jnp.allclose(out, ref, atol=2e-2, rtol=2e-2), "mismatch vs f32 reference"
    # rows of softmax output must (approximately) sum to 1
    assert jnp.allclose(jnp.sum(out, axis=-1), 1.0, atol=1e-2)

    print("KERNEL_OK")
</pallas_src>

<mosaic_0001>
module attributes {stable_mosaic.version = 11 : i64} {
  func.func @_mlp_kernel(%arg0: i32, %arg1: memref<8x128xbf16, #tpu.memory_space<vmem>>, %arg2: memref<128x128xbf16, #tpu.memory_space<vmem>>, %arg3: memref<1x128xf32, #tpu.memory_space<vmem>>, %arg4: memref<128x128xbf16, #tpu.memory_space<vmem>>, %arg5: memref<1x128xf32, #tpu.memory_space<vmem>>, %arg6: memref<8x128xf32, #tpu.memory_space<vmem>>) attributes {dimension_semantics = [#tpu.dimension_semantics<parallel>], iteration_bounds = array<i64: 2>, scalar_prefetch = 0 : i64, scratch_operands = 0 : i64, tpu.core_type = #tpu.core_type<tc>, window_params = [{transform_indices = @transform_0, window_bounds = array<i64: 8, 128>}, {pipeline_mode = #tpu.pipeline_mode<synchronous>, transform_indices = @transform_1, window_bounds = array<i64: 128, 128>}, {pipeline_mode = #tpu.pipeline_mode<synchronous>, transform_indices = @transform_2, window_bounds = array<i64: 1, 128>}, {pipeline_mode = #tpu.pipeline_mode<synchronous>, transform_indices = @transform_3, window_bounds = array<i64: 128, 128>}, {pipeline_mode = #tpu.pipeline_mode<synchronous>, transform_indices = @transform_4, window_bounds = array<i64: 1, 128>}, {transform_indices = @transform_5, window_bounds = array<i64: 8, 128>}]} {
    %c0 = arith.constant 0 : index
    %c0_0 = arith.constant 0 : index
    %0 = vector.load %arg1[%c0, %c0_0] : memref<8x128xbf16, #tpu.memory_space<vmem>>, vector<8x128xbf16>
    %c0_1 = arith.constant 0 : index
    %c0_2 = arith.constant 0 : index
    %1 = vector.load %arg2[%c0_1, %c0_2] : memref<128x128xbf16, #tpu.memory_space<vmem>>, vector<128x128xbf16>
    %cst = arith.constant dense<0.000000e+00> : vector<8x128xf32>
    %2 = tpu.matmul %0, %1, %cst {dimension_numbers = #tpu.dot_dimension_numbers<[1], [0], [0], [1], [0, 0, 1, 1], [], []>} : vector<8x128xbf16>, vector<128x128xbf16>, vector<8x128xf32> -> vector<8x128xf32>
    %c0_3 = arith.constant 0 : index
    %c0_4 = arith.constant 0 : index
    %3 = vector.load %arg3[%c0_3, %c0_4] : memref<1x128xf32, #tpu.memory_space<vmem>>, vector<1x128xf32>
    %4 = vector.broadcast %3 : vector<1x128xf32> to vector<8x128xf32>
    %5 = arith.addf %2, %4 : vector<8x128xf32>
    %cst_5 = arith.constant 5.000000e-01 : f32
    %6 = vector.broadcast %cst_5 : f32 to vector<8x128xf32>
    %7 = arith.mulf %6, %5 : vector<8x128xf32>
    %8 = math.tanh %7 : vector<8x128xf32>
    %cst_6 = arith.constant 1.000000e+00 : f32
    %9 = vector.broadcast %cst_6 : f32 to vector<8x128xf32>
    %10 = arith.addf %8, %9 : vector<8x128xf32>
    %cst_7 = arith.constant 5.000000e-01 : f32
    %11 = vector.broadcast %cst_7 : f32 to vector<8x128xf32>
    %12 = arith.mulf %11, %10 : vector<8x128xf32>
    %13 = arith.truncf %12 : vector<8x128xf32> to vector<8x128xbf16>
    %c0_8 = arith.constant 0 : index
    %c0_9 = arith.constant 0 : index
    %14 = vector.load %arg4[%c0_8, %c0_9] : memref<128x128xbf16, #tpu.memory_space<vmem>>, vector<128x128xbf16>
    %cst_10 = arith.constant dense<0.000000e+00> : vector<8x128xf32>
    %15 = tpu.matmul %13, %14, %cst_10 {dimension_numbers = #tpu.dot_dimension_numbers<[1], [0], [0], [1], [0, 0, 1, 1], [], []>} : vector<8x128xbf16>, vector<128x128xbf16>, vector<8x128xf32> -> vector<8x128xf32>
    %c0_11 = arith.constant 0 : index
    %c0_12 = arith.constant 0 : index
    %16 = vector.load %arg5[%c0_11, %c0_12] : memref<1x128xf32, #tpu.memory_space<vmem>>, vector<1x128xf32>
    %17 = vector.broadcast %16 : vector<1x128xf32> to vector<8x128xf32>
    %18 = arith.addf %15, %17 : vector<8x128xf32>
    %cst_13 = arith.constant dense<0xFF800000> : vector<8xf32>
    %19 = vector.multi_reduction <maximumf>, %18, %cst_13 [1] : vector<8x128xf32> to vector<8xf32>
    %20 = vector.shape_cast %19 : vector<8xf32> to vector<8x1xf32>
    %21 = vector.broadcast %20 : vector<8x1xf32> to vector<8x128xf32>
    %22 = arith.subf %18, %21 : vector<8x128xf32>
    %23 = math.exp %22 : vector<8x128xf32>
    %cst_14 = arith.constant dense<0.000000e+00> : vector<8xf32>
    %24 = vector.multi_reduction <add>, %23, %cst_14 [1] : vector<8x128xf32> to vector<8xf32>
    %25 = vector.shape_cast %24 : vector<8xf32> to vector<8x1xf32>
    %26 = tpu.reciprocal %25 {approx = true} : vector<8x1xf32> -> vector<8x1xf32>
    %27 = vector.broadcast %26 : vector<8x1xf32> to vector<8x128xf32>
    %28 = arith.mulf %23, %27 : vector<8x128xf32>
    %c0_15 = arith.constant 0 : index
    %c0_16 = arith.constant 0 : index
    %29 = vector.load %arg6[%c0_15, %c0_16] : memref<8x128xf32, #tpu.memory_space<vmem>>, vector<8x128xf32>
    tpu.vector_store %arg6[%c0_15, %c0_16], %28 {strides = array<i32>} : memref<8x128xf32, #tpu.memory_space<vmem>>, vector<8x128xf32>,
    return
  }
  func.func @transform_0(%arg0: i32) -> (i32, i32) {
    %c0_i32 = arith.constant 0 : i32
    %c0_i32_0 = arith.constant 0 : i32
    return %arg0, %c0_i32 : i32, i32
  }
  func.func @transform_1(%arg0: i32) -> (i32, i32) {
    %c0_i32 = arith.constant 0 : i32
    %c0_i32_0 = arith.constant 0 : i32
    %c0_i32_1 = arith.constant 0 : i32
    return %c0_i32, %c0_i32_0 : i32, i32
  }
  func.func @transform_2(%arg0: i32) -> (i32, i32) {
    %c0_i32 = arith.constant 0 : i32
    %c0_i32_0 = arith.constant 0 : i32
    %c0_i32_1 = arith.constant 0 : i32
    return %c0_i32, %c0_i32_0 : i32, i32
  }
  func.func @transform_3(%arg0: i32) -> (i32, i32) {
    %c0_i32 = arith.constant 0 : i32
    %c0_i32_0 = arith.constant 0 : i32
    %c0_i32_1 = arith.constant 0 : i32
    return %c0_i32, %c0_i32_0 : i32, i32
  }
  func.func @transform_4(%arg0: i32) -> (i32, i32) {
    %c0_i32 = arith.constant 0 : i32
    %c0_i32_0 = arith.constant 0 : i32
    %c0_i32_1 = arith.constant 0 : i32
    return %c0_i32, %c0_i32_0 : i32, i32
  }
  func.func @transform_5(%arg0: i32) -> (i32, i32) {
    %c0_i32 = arith.constant 0 : i32
    %c0_i32_0 = arith.constant 0 : i32
    return %arg0, %c0_i32 : i32, i32
  }
}

</mosaic_0001>

<bundles_post_ra>
// kernel: tpu_custom_call.1
= control target key start
LH: loop header
LB: loop body
LE: loop exit
PB: predicated region body
PF: predicated region fallthrough
CT: control target
= control target key end

     0   :  { %10 = vsyncpa [#allocation3], 0  ;;  %s1079_s0 = inlined_call_operand.hbm [shape: bf16[16,128], index: 0, kind: input, shape index: {}]   ;;  %s1080_s1 = inlined_call_operand.hbm [shape: bf16[128,128], index: 1, kind: input, shape index: {}]   ;;  %s1081_s2 = inlined_call_operand.vmem [shape: f32[1,128], index: 2, kind: input, shape index: {}]   ;;  %s1082_s3 = inlined_call_operand.hbm [shape: bf16[128,128], index: 3, kind: input, shape index: {}]   ;;  %s1083_s4 = inlined_call_operand.vmem [shape: f32[1,128], index: 4, kind: input, shape index: {}]   ;;  %s1084_s5 = inlined_call_operand.hbm [shape: f32[16,128], index: 5, kind: output, shape index: {}]  }
   0x1   :  { %12 = vsyncpa [#allocation3 + $0x1], 0 }
   0x2   :  { %13 = vsyncpa [#allocation6], 0 }
   0x3   :  { %14 = vsyncpa [#allocation4], 0 }
   0x4   :  { %16 = vsyncpa [#allocation4 + $0x1], 0  ;;  %s927_s18 = smov 0   ;;  %s929_s19 = smov 0  }
   0x5   :  { %s931_s20 = smov 0   ;;  %s933_s21 = smov 0  }
   0x6 LB: > { %s174_s24 = sshll.u32 %s1080_s1, 4  ;;  %s951_s25 = sadd.s32 4294967295, %s891_s21   ;;  %s891_s21 = sphi %s933_s21, %s1095_s21   ;;  %s887_s20 = sphi %s931_s20, %s1094_s20   ;;  %s883_s19 = sphi %s929_s19, %s1093_s19   ;;  %s879_s18 = sphi %s927_s18, %s1092_s18   ;;  %s175_s24 = int_to_ptr.hbm [resolvable:$true] %s174_s24 }
   0x7   : > { %p559_p0 = scmp.ge.s32.totalorder %s891_s21, 1  ;;  %p43_p1 = scmp.eq.s32.totalorder %s951_s25, 0 }
   0x8   : > { %p163_p2 = scmp.lt.s32.totalorder %s891_s21, 3  ;;  %s893_s27 = smov [#allocation5]  }
   0x9   : > { %s176_s28 = sshll.u32 %s893_s27, 4  ;;  %s191_s6 = sshll.u32 %s1082_s3, 4  ;;  %s177_s28 = int_to_ptr.vmem [resolvable:$true] %s176_s28  ;;  %s192_s6 = int_to_ptr.hbm [resolvable:$true] %s191_s6 }
   0xa   : > { %p956_p3 = pnand %p559_p0, %p163_p2  ;;  %s894_s7 = smov [#allocation7]  }
   0xb   : > { %s193_s8 = sshll.u32 %s894_s7, 4  ;;  %s895_s9 = smov 64   ;;  %s194_s8 = int_to_ptr.vmem [resolvable:$true] %s193_s8 }
   0xc   : > { %p666_p4 = pneg %p956_p3  ;;  %s896_s10 = smov 4  }
   0xd   : > { %s558_s11 = sadd.s32 4294967294, %s891_s21   ;;  %s970_s12 = sadd.s32 1, %s891_s21  }
   0xe   : > { %p667_p6 = pnand %p666_p4, %p43_p1  ;;  %s26_s13 = ssub.s32 %s891_s21, %s970_s12 }
   0xf   : > { %s29_s14 = sadd.s32 1, %s887_s20  ;;  %p27_p7 = scmp.eq.s32.totalorder %s26_s13, 0 }
  0x10   : > { %669 = dma.hbm_to_vmem [thread:$0]  (!%p667_p6), %s175_s24, 1024, %s177_s28, [#allocation6], %s895_s9, %s895_s9, %s896_s10  }
  0x11   : > { %672 = dma.hbm_to_vmem [thread:$0]  (!%p667_p6), %s192_s6, 1024, %s194_s8, [#allocation6], %s895_s9, %s895_s9, %s896_s10  }
  0x12   : > { %p36_p8 = scmp.ne.s32.totalorder %s887_s20, %s883_s19  ;;  %p37_p9 = scmp.eq.s32.totalorder %s891_s21, 0 }
  0x13   : > { %p42_p10 = scmp.ne.s32.totalorder %s883_s19, %s879_s18  ;;  %p150_p13 = scmp.eq.s32.totalorder %s951_s25, 1 }
  0x14   : > { %s981_s15 = scalar_select %p27_p7, %s887_s20, %s29_s14  }
  0x15   : > { %p983_p11 = por %p37_p9, %p36_p8  ;;  %p989_p12 = por %p43_p1, %p42_p10 }
  0x16   : > { %p156_p0 = scmp.eq.s32.totalorder %s558_s11, 1  ;;  %p683_p2 = scmp.lt.s32.totalorder %s891_s21, 2 }
  0x17   : > { %s210_s22 = sand.u32 1, %s887_s20   ;;  %p996_p4 = por %p150_p13, %p36_p8 }
  0x18   : > { %p1000_p6 = por %p156_p0, %p42_p10  ;;  %s563_s27 = sshll.u32 %s210_s22, 2 }
  0x19   : > { %s564_s28 = sshll.u32 %s891_s21, 2  ;;  %s214_s7 = scalar_lea.vmem [#allocation2], %s563_s27 }
  0x1a   : > { %s218_s6 = scalar_lea.hbm %s1079_s0, %s564_s28  ;;  %s222_s8 = sshll.u32 %s214_s7, 4  ;;  %s223_s8 = int_to_ptr.vmem [resolvable:$true] %s222_s8 }
  0x1b   : > { %s220_s9 = sshll.u32 %s218_s6, 4  ;;  %p1010_p7 = pnand %p683_p2, %p983_p11  ;;  %s221_s9 = int_to_ptr.hbm [resolvable:$true] %s220_s9 }
  0x1c   : > { %s211_s11 = scalar_lea.sflag [#allocation3], %s210_s22  ;;  %s791_s13 = sshra.s32 %s221_s9, 4  ;;  %s792_s13 = int_to_ptr.hbm [resolvable:$true] %s791_s13 }
  0x1d   : > { %s793_s14 = scalar_lea.hbm %s792_s13, 4  ;;  %p795_p9 = pneg %p1010_p7 }
  0x1e   : > { %p794_p8 = scmp.ne.s32.totalorder %s792_s13, %s793_s14  ;;  %s798_s29 = scalar_lea.hbm %s1079_s0, 8 }
  0x1f   : > { %p799_p11 = scmp.lt.s32.totalorder %s792_s13, %s1079_s0  ;;  %p800_p0 = scmp.lt.s32.totalorder %s798_s29, %s793_s14 }
  0x20   : > { %p796_p10 = pnand %p795_p9, %p794_p8 }
  0x21   : > { %p801_p2 = por %p800_p0, %p799_p11 }
  0x22   : > { %p797_p13 = pneg %p796_p10 }
  0x24   : > { %p802_p5 = pnand %p801_p2, %p797_p13 }
  0x26   : > { %805 = shalt.err (!%p802_p5)
}
  0x27   : > { %676 = dma.hbm_to_vmem [thread:$0]  (!%p1010_p7), %s221_s9, 64, %s223_s8, %s211_s11  }
  0x28   : > { %231 = sbr.rel (%p956_p3) target bundleno = 606 (0x25e), region = 40  ;;  %s1027_s22 = sand.u32 (!%p956_p3), 1, %s883_s19  }
  0x29   : > { %s566_s6 = sshll.u32 (!%p956_p3), %s1027_s22, 2  ;;  %s234_s7 = scalar_lea.sflag (!%p956_p3), [#allocation3], %s1027_s22 }
  0x2a   : > { %s237_s27 = scalar_lea.vmem (!%p956_p3), [#allocation2], %s566_s6 }
  0x2d   : > { %866 = dma.done.wait (%p989_p12), %s234_s7, 64  }
  0x2e   : > { %868 = vsyncadd (%p989_p12), %s234_s7, 4294967232 }
  0x2f   : > { %870 = dma.done.wait (%p43_p1), [#allocation6], 2048  }
  0x30   : > { %872 = vsyncadd (%p43_p1), [#allocation6], 4294965248  ;;  %v645_v0 = vld [vmem:[#allocation5 + $0x38] sm:$0xff]  ;;  %v644_v1 = vld [vmem:[#allocation5 + $0x30] sm:$0xff]  ;;  %s569_s10 = sshll.u32 %s1027_s22, 3  ;;  %s635_s11 = sshll.u32 %s951_s25, 3 }
  0x31   : > { %344 = vmatpush.bf16.msra.mxu0 %v645_v0  ;;  %v653_v2 = vld [vmem:[#allocation7 + $0x38] sm:$0xff]  ;;  %v652_v3 = vld [vmem:[#allocation7 + $0x30] sm:$0xff]  ;;  %v643_v4 = vld [vmem:[#allocation5 + $0x28] sm:$0xff]  ;;  %s464_s28 = scalar_lea.hbm %s1084_s5, %s635_s11  ;;  %s274_s29 = scalar_lea.vmem [#allocation8], %s569_s10 }
  0x32   : > { %430 = vmatpush.bf16.msra.mxu1 %v653_v2  ;;  %v651_v5 = vld [vmem:[#allocation7 + $0x28] sm:$0xff]  ;;  %v642_v6 = vld [vmem:[#allocation5 + $0x20] sm:$0xff]  ;;  %v641_v8 = vld [vmem:[#allocation5 + $0x18] sm:$0xff]  ;;  %s466_s30 = sshll.u32 %s274_s29, 4  ;;  %s468_s16 = sshll.u32 %s464_s28, 4  ;;  %s467_s30 = int_to_ptr.vmem [resolvable:$true] %s466_s30  ;;  %s469_s16 = int_to_ptr.hbm [resolvable:$true] %s468_s16 }
  0x33   : > { %v650_v7 = vld [vmem:[#allocation7 + $0x20] sm:$0xff]  ;;  %v640_v9 = vld [vmem:[#allocation5 + $0x10] sm:$0xff]  ;;  %v639_v10 = vld [vmem:[#allocation5 + $0x8] sm:$0xff]  ;;  %s454_s6 = scalar_lea.sflag [#allocation4], %s1027_s22  ;;  %s835_s7 = sshra.s32 %s469_s16, 4  ;;  %s836_s7 = int_to_ptr.hbm [resolvable:$true] %s835_s7 }
  0x34   : > { %v638_v11 = vld [vmem:[#allocation5] sm:$0xff]  ;;  %v275_v12 = vld [vmem:[%s237_s27] sm:$0xf]  ;;  %v648_v14 = vld [vmem:[#allocation7 + $0x10] sm:$0xff]  ;;  %s837_s27 = scalar_lea.hbm %s836_s7, 8  ;;  %s841_s17 = scalar_lea.hbm %s1084_s5, 16 }
  0x35   : > { %345 = vmatpush.bf16.msra.mxu0 %v644_v1  ;;  %v649_v13 = vld [vmem:[#allocation7 + $0x18] sm:$0xff]  ;;  %v647_v15 = vld [vmem:[#allocation7 + $0x8] sm:$0xff]  ;;  %v646_v16 = vld [vmem:[#allocation7] sm:$0xff]  ;;  %p838_p1 = scmp.ne.s32.totalorder %s836_s7, %s837_s27  ;;  %p842_p12 = scmp.lt.s32.totalorder %s836_s7, %s1084_s5 }
  0x36   : > { %431 = vmatpush.bf16.msra.mxu1 %v652_v3  ;;  %v723_v17 = vld [vmem:[%s1081_s2] ss:$0 sm:$0xff]  ;;  %p843_p7 = scmp.lt.s32.totalorder %s841_s17, %s837_s27 }
  0x37   : > { %v724_v26 = vld [vmem:[%s1083_s4] ss:$0 sm:$0xff]  ;;  %p839_p3 = pnand %p838_p1, %p996_p4 }
  0x38   : > { %p844_p8 = por %p843_p7, %p842_p12 }
  0x39   : > { %346 = vmatpush.bf16.msra.mxu0 %v643_v4  ;;  %p840_p5 = pneg %p839_p3 }
  0x3a   : > { %432 = vmatpush.bf16.msra.mxu1 %v651_v5 }
  0x3b   : > { %p845_p9 = pnand %p844_p8, %p840_p5 }
  0x3d   : > { %347 = vmatpush.bf16.msra.mxu0 %v642_v6 }
  0x3e   : > { %433 = vmatpush.bf16.msra.mxu1 %v650_v7 }
  0x41   : > { %348 = vmatpush.bf16.msra.mxu0 %v641_v8 }
  0x42   : > { %434 = vmatpush.bf16.msra.mxu1 %v649_v13 }
  0x45   : > { %349 = vmatpush.bf16.msra.mxu0 %v640_v9 }
  0x46   : > { %435 = vmatpush.bf16.msra.mxu1 %v648_v14 }
  0x49   : > { %350 = vmatpush.bf16.msra.mxu0 %v639_v10 }
  0x4a   : > { %436 = vmatpush.bf16.msra.mxu1 %v647_v15 }
  0x4d   : > { %351 = vmatpush.bf16.msra.mxu0 %v638_v11 }
  0x4e   : > { %437 = vmatpush.bf16.msra.mxu1 %v646_v16 }
  0x50   : > { %352 = vmatmul.bf16.vlgmr.msra.gmra.mxu0 %v275_v12 }
  0xcd   : > { %v353_v18 = vpop.f32.mrf.mxu0 }
  0xce   : > { %v354_v19 = vadd.f32 %v723_v17, %v353_v18 }
  0xd0   : > { %v357_v20 = vmul.f32 0.5, %v354_v19 }
  0xd2   : > { %725 = vtanh.f32 %v357_v20 }
  0xd5   : > { %v355_v21 = vpop.f32.mrf.mxu0 }
  0xd8   : > { %v726_v22 = vpop.eup %725 }
  0xd9   : > { %v359_v23 = vadd.f32 1.0, %v726_v22 }
  0xdb   : > { %v360_v24 = vmul.f32 0.5, %v359_v23 }
  0xdd   : > { %v361_v25 = vpack.c.bf16 %v360_v24, %v360_v24 }
  0xdf   : > { %438 = vmatmul.bf16.vlgmr.msra.gmra.mxu1 %v361_v25 }
 0x15c   : > { %v439_v27 = vpop.f32.mrf.mxu1 }
 0x15d   : > { %v440_v28 = vadd.f32 %v724_v26, %v439_v27 }
 0x15f   : > { %443 = vmax.xlane.f32.xlu0 %v440_v28 }
 0x164   : > { %v441_v29 = vpop.f32.mrf.mxu1 }
 0x1d2   : > { %v444_v30 = vpop.xlane.xlu0 %443 }
 0x1d3   : > { %v445_v31 = vsub.f32 %v440_v28, %v444_v30 }
 0x1d5   : > { %v446_v32 = vmul.f32 1.442695, %v445_v31 }
 0x1d7   : > { %727 = vpow2.f32 %v446_v32 }
 0x1dd   : > { %v728_v33 = vpop.eup %727 }
 0x1de   : > { %448 = vadd.xlane.f32.xlu0 %v728_v33 }
 0x251   : > { %v449_v34 = vpop.xlane.xlu0 %448 }
 0x252   : > { %729 = vrcp.f32 %v449_v34 }
 0x258   : > { %v730_v35 = vpop.eup %729 }
 0x259   : > { %v451_v36 = vmul.f32 %v730_v35, %v728_v33 }
 0x25b   : > { %452 = vst [vmem:[%s274_s29] sm:$0xff] %v451_v36 }
 0x25c   : > { %848 = shalt.err (!%p845_p9)
}
 0x25d   : > { %664 = dma.vmem_to_hbm [thread:$0]  (%p996_p4), %s467_s30, 128, %s469_s16, %s454_s6  }
 0x25e PF: > { %s480_s22 = sand.u32 1, %s879_s18   ;;  %p1091_p10 = scmp.ge.s32.totalorder %s891_s21, 2 }
 0x25f   : > { %s481_s10 = scalar_lea.sflag [#allocation4], %s480_s22 }
 0x260   : > { %p678_p13 = pnand %p1091_p10, %p1000_p6 }
 0x262   : > { %p679_p11 = pneg %p678_p13 }
 0x264   : > { %874 = dma.done.wait (%p679_p11), %s481_s10, 128  }
 0x265   : > { %876 = vsyncadd (%p679_p11), %s481_s10, 4294967168  ;;  %p19_p0 = scmp.ge.s32.totalorder %s970_s12, 4   ;;  %s1092_s18 = smov %s883_s19 }
 0x266   : > { %s1093_s19 = smov %s887_s20  ;;  %s1094_s20 = smov %s981_s15 }
 0x267   : > { %s1095_s21 = smov %s970_s12  ;;  %21 = sbr.rel (!%p19_p0) target bundleno = 6 (0x6), region = 93 }
 0x26c   :  { %487 = vsyncpa [#allocation3], 1 }
 0x26d   :  { %489 = vsyncpa [#allocation3 + $0x1], 1 }
 0x26e   :  { %490 = vsyncpa [#allocation6], 1 }
 0x26f   :  { %491 = vsyncpa [#allocation4], 1 }
 0x270   :  { %493 = vsyncpa [#allocation4 + $0x1], 1 }

</bundles_post_ra>
